<compile_context>
chip_gen: v7x
topology: tpu7x:2x2x1
jax: 0.10.0
libtpu: 0.0.40
codegen_flags: <defaults>
</compile_context>

<pallas_src>
import functools

import jax
import jax.numpy as jnp
from jax.experimental import pallas as pl
from jax.experimental.pallas import tpu as pltpu
from jax.scipy.linalg import block_diag


def _round_up(a, b):
    return ((a + b - 1) // b) * b


# ----------------------------- kernel ---------------------------------------


def _maxout_mlp_kernel(
    x_ref, w1_ref, b1_ref, w2_ref, b2_ref, w3_ref, b3_ref, out_ref, *, slab, k
):
    """slab = R*H2 (per-maxout-unit output width in the folded layout)."""
    cdt = w1_ref.dtype                     # streaming/compute dtype (bfloat16)

    def maxout(z):
        # z: (tile, k*slab) f32, units laid out as k contiguous `slab`-wide
        # lane groups (128-lane aligned for the default config) -> full-vreg max.
        h = z[:, :slab]
        for u in range(1, k):
            h = jnp.maximum(h, z[:, u * slab:(u + 1) * slab])
        return h

    # x streams as f32 and is cast to bf16 on the VPU (free next to the matmuls).
    x = x_ref[...].astype(cdt)
    # fc1 maxout (bn0 already folded into w1/b1); f32 accumulate + f32 bias.
    z = jnp.dot(x, w1_ref[...], preferred_element_type=jnp.float32) + b1_ref[...]
    h = maxout(z)
    # fc2 maxout (bn1 folded; eval-mode dropout is identity).
    z = jnp.dot(h.astype(cdt), w2_ref[...], preferred_element_type=jnp.float32) + b2_ref[...]
    h = maxout(z)
    # final linear (bn2 folded) + sigmoid (eval branch of forward()), f32 math,
    # cast only at the final store.
    logits = jnp.dot(h.astype(cdt), w3_ref[...], preferred_element_type=jnp.float32) + b3_ref[...]
    out_ref[...] = jax.nn.sigmoid(logits).astype(out_ref.dtype)


# ----------------------------- wrapper ---------------------------------------


def maxout_mlp_forward(x, folded, *, tile_b=8192, out_dtype=jnp.bfloat16):
    """x: any shape whose trailing dims fold to (-1, H1), like torch .view."""
    R = folded["fold"]
    H1, H2, L, K = folded["h1"], folded["h2"], folded["labels"], folded["k"]
    FI = R * H1            # folded input width  (128 for H1=32)
    SLAB = R * H2          # per-unit output width (128 for H2=32)
    FO = R * L             # folded output width (92 for L=23)

    xf = x.reshape(-1, H1)          # free, row-major metadata reshape
    N = xf.shape[0]

    # Fallback pad only when N % R != 0 (<= R-1 rows); common case copies nothing.
    pad = (-N) % R
    if pad:
        xf = jnp.pad(xf, ((0, pad), (0, 0)))
    Nf = (N + pad) // R
    xf = xf.reshape(Nf, FI)         # free reshape: 4 samples per 128-lane row

    # Folded-row tile: as large as possible (amortize per-step overhead), but
    #  - capped so the grid has >= 2 steps when possible (v7x: 2 TensorCores),
    #  - a multiple of 16 (clean f32/bf16 sublane tiling),
    #  - clamped to the full array (block == full array dims is always legal),
    # and the tail tile is handled by Pallas partial-block masking (no big pad).
    tb = _round_up(min(max(tile_b // R, 1), pl.cdiv(Nf, 2)), 16)
    tb = max(16, tb)
    if tb >= Nf:
        tb = Nf
    grid = (pl.cdiv(Nf, tb),)

    rep = lambda i: (0, 0)   # weights/biases: constant block -> resident in VMEM

    out = pl.pallas_call(
        functools.partial(_maxout_mlp_kernel, slab=SLAB, k=K),
        out_shape=jax.ShapeDtypeStruct((Nf, FO), out_dtype),
        grid_spec=pltpu.PrefetchScalarGridSpec(
            num_scalar_prefetch=0,
            grid=grid,
            in_specs=[
                pl.BlockSpec((tb, FI), lambda i: (i, 0)),   # x tile (streamed, f32)
                pl.BlockSpec((FI, K * SLAB), rep),          # W1 block-diag (bf16)
                pl.BlockSpec((1, K * SLAB), rep),           # b1 (f32)
                pl.BlockSpec((SLAB, K * SLAB), rep),        # W2 block-diag (bf16)
                pl.BlockSpec((1, K * SLAB), rep),           # b2 (f32)
                pl.BlockSpec((SLAB, FO), rep),              # W3 block-diag (bf16)
                pl.BlockSpec((1, FO), rep),                 # b3 (f32)
            ],
            out_specs=pl.BlockSpec((tb, FO), lambda i: (i, 0)),
        ),
        compiler_params=pltpu.CompilerParams(
            dimension_semantics=("parallel",),
            vmem_limit_bytes=32 * 1024 * 1024,
        ),
    )(
        xf,
        folded["w1"], folded["b1"],
        folded["w2"], folded["b2"],
        folded["w3"], folded["b3"],
    )
    # Output lanes are sample-major -> this reshape is free; slice off pad rows.
    return out.reshape(Nf * R, L)[:N]


# --------------------- parameter folding (JAX glue) --------------------------


def fold_params(p, *, eps=1e-5, compute_dtype=jnp.bfloat16, fold=None):
    """Fold eval-mode BatchNorms into adjacent linears, then batch-fold R rows
    into the lane dimension with block-diagonal weights (unit-major slabs)."""
    K, H1, H2 = p["w1"].shape
    L = p["w3"].shape[1]
    R = fold if fold is not None else max(1, 128 // max(H1, H2))

    def bn_scale_shift(g, b, m, v):
        s = g * jax.lax.rsqrt(v + eps)
        return s, b - m * s

    s0, t0 = bn_scale_shift(p["bn0_gamma"], p["bn0_beta"], p["bn0_mean"], p["bn0_var"])
    s1, t1 = bn_scale_shift(p["bn1_gamma"], p["bn1_beta"], p["bn1_mean"], p["bn1_var"])
    s2, t2 = bn_scale_shift(p["bn2_gamma"], p["bn2_beta"], p["bn2_mean"], p["bn2_var"])

    # bn -> linear folding, all in f32 (cast to bf16 only at the end).
    w1 = p["w1"] * s0[None, :, None]                          # (K,H1,H2)
    b1 = p["b1"] + jnp.einsum("i,kio->ko", t0, p["w1"])       # (K,H2)
    w2 = p["w2"] * s1[None, :, None]
    b2 = p["b2"] + jnp.einsum("i,kio->ko", t1, p["w2"])
    w3 = p["w3"] * s2[:, None]                                # (H2,L)
    b3 = p["b3"] + t2 @ p["w3"]                               # (L,)

    # Batch-folding: block-diagonal over R samples.  Layout per maxout layer:
    # columns = [unit0: s0(H2) s1(H2) ... | unit1: s0 s1 ...], so maxout is a
    # max of K contiguous (R*H2)-wide lane slabs and the result stays
    # sample-major (matching the next layer's block-diagonal rows).
    def bd_maxout(w_u, b_u):
        W = jnp.concatenate([block_diag(*([w_u[k]] * R)) for k in range(K)], axis=1)
        b = jnp.concatenate([jnp.tile(b_u[k], R) for k in range(K)], axis=0)
        return W, b

    w1bd, b1bd = bd_maxout(w1, b1)            # (R*H1, K*R*H2), (K*R*H2,)
    w2bd, b2bd = bd_maxout(w2, b2)            # (R*H2, K*R*H2), (K*R*H2,)
    w3bd = block_diag(*([w3] * R))            # (R*H2, R*L)
    b3bd = jnp.tile(b3, R)                    # (R*L,)

    return dict(
        w1=w1bd.astype(compute_dtype), b1=b1bd[None, :].astype(jnp.float32),
        w2=w2bd.astype(compute_dtype), b2=b2bd[None, :].astype(jnp.float32),
        w3=w3bd.astype(compute_dtype), b3=b3bd[None, :].astype(jnp.float32),
        fold=R, h1=H1, h2=H2, labels=L, k=K,
    )


# --------------------- test params + pure-JAX reference ----------------------


def make_params(key, H1, H2, num_labels, num_maxout=2):
    ks = jax.random.split(key, 18)
    s = 0.1
    # Linear weights stored as (in, out) == PyTorch weight.T
    w1 = jax.random.normal(ks[0], (num_maxout, H1, H2), jnp.float32) * s
    b1 = jax.random.normal(ks[1], (num_maxout, H2), jnp.float32) * s
    w2 = jax.random.normal(ks[2], (num_maxout, H2, H2), jnp.float32) * s
    b2 = jax.random.normal(ks[3], (num_maxout, H2), jnp.float32) * s
    w3 = jax.random.normal(ks[4], (H2, num_labels), jnp.float32) * s
    b3 = jax.random.normal(ks[5], (num_labels,), jnp.float32) * s

    def bn(kg, kb, km, kv, F):
        return dict(
            gamma=1.0 + 0.1 * jax.random.normal(kg, (F,), jnp.float32),
            beta=0.1 * jax.random.normal(kb, (F,), jnp.float32),
            mean=0.1 * jax.random.normal(km, (F,), jnp.float32),
            var=1.0 + 0.1 * jax.random.uniform(kv, (F,), jnp.float32),
        )

    bn0 = bn(ks[6], ks[7], ks[8], ks[9], H1)
    bn1 = bn(ks[10], ks[11], ks[12], ks[13], H2)
    bn2 = bn(ks[14], ks[15], ks[16], ks[17], H2)

    p = dict(w1=w1, b1=b1, w2=w2, b2=b2, w3=w3, b3=b3)
    for name, d in (("bn0", bn0), ("bn1", bn1), ("bn2", bn2)):
        for k, v in d.items():
            p[f"{name}_{k}"] = v
    return p


def ref_forward(x, p, eps=1e-5):
    H1 = p["bn0_gamma"].shape[0]

    def bn(h, pre):
        s = p[f"{pre}_gamma"] * jax.lax.rsqrt(p[f"{pre}_var"] + eps)
        return (h - p[f"{pre}_mean"]) * s + p[f"{pre}_beta"]

    h = x.reshape(-1, H1).astype(jnp.float32)
    h = bn(h, "bn0")
    u = jnp.einsum("ni,kio->kno", h, p["w1"]) + p["b1"][:, None, :]
    h = jnp.max(u, axis=0)
    h = bn(h, "bn1")                      # dropout: identity in eval
    u = jnp.einsum("ni,kio->kno", h, p["w2"]) + p["b2"][:, None, :]
    h = jnp.max(u, axis=0)
    h = bn(h, "bn2")
    logits = h @ p["w3"] + p["b3"]
    return jax.nn.sigmoid(logits)


if __name__ == "__main__":
    H1, H2, NUM_LABELS = 32, 32, 23
    key = jax.random.PRNGKey(0)
    kx, kx2, kx3, kp = jax.random.split(key, 4)

    params = make_params(kp, H1, H2, NUM_LABELS)
    folded = fold_params(params)          # fold factor R = 4 for H1=H2=32

    # Case 1: (4, 2, 32) -> .view(-1, 32) gives 8 rows (2 folded rows, grid 1).
    x = jax.random.normal(kx, (4, 2, H1), jnp.float32)
    out = jax.block_until_ready(maxout_mlp_forward(x, folded))
    exp = ref_forward(x, params)
    assert out.shape == (8, NUM_LABELS)
    assert jnp.allclose(out, exp, atol=2e-2), "mismatch vs JAX reference (case 1)"

    # Case 2: N=18 (not a multiple of the fold factor) -> exercises the tiny
    # fallback pad of <= 3 rows and the full-array single-block path.
    x2 = jax.random.normal(kx2, (3, 6, H1), jnp.float32)
    out2 = jax.block_until_ready(maxout_mlp_forward(x2, folded))
    exp2 = ref_forward(x2, params)
    assert out2.shape == (18, NUM_LABELS)
    assert jnp.allclose(out2, exp2, atol=2e-2), "mismatch vs JAX reference (case 2)"

    # Case 3: N=100 -> 25 folded rows, tile 16 -> 2-step grid with a partial
    # last block (exercises cdiv grid + masked tail, no input padding pass).
    x3 = jax.random.normal(kx3, (100, H1), jnp.float32)
    out3 = jax.block_until_ready(maxout_mlp_forward(x3, folded))
    exp3 = ref_forward(x3, params)
    assert out3.shape == (100, NUM_LABELS)
    assert jnp.allclose(out3, exp3, atol=2e-2), "mismatch vs JAX reference (case 3)"

    print("KERNEL_OK")
</pallas_src>

<mosaic_0001>
module attributes {stable_mosaic.version = 11 : i64} {
  func.func @_maxout_mlp_kernel(%arg0: i32, %arg1: memref<2x128xf32, #tpu.memory_space<vmem>>, %arg2: memref<128x256xbf16, #tpu.memory_space<vmem>>, %arg3: memref<1x256xf32, #tpu.memory_space<vmem>>, %arg4: memref<128x256xbf16, #tpu.memory_space<vmem>>, %arg5: memref<1x256xf32, #tpu.memory_space<vmem>>, %arg6: memref<128x92xbf16, #tpu.memory_space<vmem>>, %arg7: memref<1x92xf32, #tpu.memory_space<vmem>>, %arg8: memref<2x92xbf16, #tpu.memory_space<vmem>>) attributes {dimension_semantics = [#tpu.dimension_semantics<parallel>], iteration_bounds = array<i64: 1>, scalar_prefetch = 0 : i64, scratch_operands = 0 : i64, tpu.core_type = #tpu.core_type<tc>, window_params = [{transform_indices = @transform_0, window_bounds = array<i64: 2, 128>}, {pipeline_mode = #tpu.pipeline_mode<synchronous>, transform_indices = @transform_1, window_bounds = array<i64: 128, 256>}, {pipeline_mode = #tpu.pipeline_mode<synchronous>, transform_indices = @transform_2, window_bounds = array<i64: 1, 256>}, {pipeline_mode = #tpu.pipeline_mode<synchronous>, transform_indices = @transform_3, window_bounds = array<i64: 128, 256>}, {pipeline_mode = #tpu.pipeline_mode<synchronous>, transform_indices = @transform_4, window_bounds = array<i64: 1, 256>}, {pipeline_mode = #tpu.pipeline_mode<synchronous>, transform_indices = @transform_5, window_bounds = array<i64: 128, 92>}, {pipeline_mode = #tpu.pipeline_mode<synchronous>, transform_indices = @transform_6, window_bounds = array<i64: 1, 92>}, {transform_indices = @transform_7, window_bounds = array<i64: 2, 92>}]} {
    %c0 = arith.constant 0 : index
    %c0_0 = arith.constant 0 : index
    %0 = vector.load %arg1[%c0, %c0_0] : memref<2x128xf32, #tpu.memory_space<vmem>>, vector<2x128xf32>
    %1 = arith.truncf %0 : vector<2x128xf32> to vector<2x128xbf16>
    %c0_1 = arith.constant 0 : index
    %c0_2 = arith.constant 0 : index
    %2 = vector.load %arg2[%c0_1, %c0_2] : memref<128x256xbf16, #tpu.memory_space<vmem>>, vector<128x256xbf16>
    %cst = arith.constant dense<0.000000e+00> : vector<2x256xf32>
    %3 = tpu.matmul %1, %2, %cst {dimension_numbers = #tpu.dot_dimension_numbers<[1], [0], [0], [1], [0, 0, 1, 1], [], []>} : vector<2x128xbf16>, vector<128x256xbf16>, vector<2x256xf32> -> vector<2x256xf32>
    %c0_3 = arith.constant 0 : index
    %c0_4 = arith.constant 0 : index
    %4 = vector.load %arg3[%c0_3, %c0_4] : memref<1x256xf32, #tpu.memory_space<vmem>>, vector<1x256xf32>
    %5 = vector.broadcast %4 : vector<1x256xf32> to vector<2x256xf32>
    %6 = arith.addf %3, %5 : vector<2x256xf32>
    %7 = vector.extract_strided_slice %6 {offsets = [0, 0], sizes = [2, 128], strides = [1, 1]} : vector<2x256xf32> to vector<2x128xf32>
    %8 = vector.extract_strided_slice %6 {offsets = [0, 128], sizes = [2, 128], strides = [1, 1]} : vector<2x256xf32> to vector<2x128xf32>
    %9 = arith.maximumf %7, %8 : vector<2x128xf32>
    %10 = arith.truncf %9 : vector<2x128xf32> to vector<2x128xbf16>
    %c0_5 = arith.constant 0 : index
    %c0_6 = arith.constant 0 : index
    %11 = vector.load %arg4[%c0_5, %c0_6] : memref<128x256xbf16, #tpu.memory_space<vmem>>, vector<128x256xbf16>
    %cst_7 = arith.constant dense<0.000000e+00> : vector<2x256xf32>
    %12 = tpu.matmul %10, %11, %cst_7 {dimension_numbers = #tpu.dot_dimension_numbers<[1], [0], [0], [1], [0, 0, 1, 1], [], []>} : vector<2x128xbf16>, vector<128x256xbf16>, vector<2x256xf32> -> vector<2x256xf32>
    %c0_8 = arith.constant 0 : index
    %c0_9 = arith.constant 0 : index
    %13 = vector.load %arg5[%c0_8, %c0_9] : memref<1x256xf32, #tpu.memory_space<vmem>>, vector<1x256xf32>
    %14 = vector.broadcast %13 : vector<1x256xf32> to vector<2x256xf32>
    %15 = arith.addf %12, %14 : vector<2x256xf32>
    %16 = vector.extract_strided_slice %15 {offsets = [0, 0], sizes = [2, 128], strides = [1, 1]} : vector<2x256xf32> to vector<2x128xf32>
    %17 = vector.extract_strided_slice %15 {offsets = [0, 128], sizes = [2, 128], strides = [1, 1]} : vector<2x256xf32> to vector<2x128xf32>
    %18 = arith.maximumf %16, %17 : vector<2x128xf32>
    %19 = arith.truncf %18 : vector<2x128xf32> to vector<2x128xbf16>
    %c0_10 = arith.constant 0 : index
    %c0_11 = arith.constant 0 : index
    %20 = vector.load %arg6[%c0_10, %c0_11] : memref<128x92xbf16, #tpu.memory_space<vmem>>, vector<128x92xbf16>
    %cst_12 = arith.constant dense<0.000000e+00> : vector<2x92xf32>
    %21 = tpu.matmul %19, %20, %cst_12 {dimension_numbers = #tpu.dot_dimension_numbers<[1], [0], [0], [1], [0, 0, 1, 1], [], []>} : vector<2x128xbf16>, vector<128x92xbf16>, vector<2x92xf32> -> vector<2x92xf32>
    %c0_13 = arith.constant 0 : index
    %c0_14 = arith.constant 0 : index
    %22 = vector.load %arg7[%c0_13, %c0_14] : memref<1x92xf32, #tpu.memory_space<vmem>>, vector<1x92xf32>
    %23 = vector.broadcast %22 : vector<1x92xf32> to vector<2x92xf32>
    %24 = arith.addf %21, %23 : vector<2x92xf32>
    %25 = arith.negf %24 : vector<2x92xf32>
    %26 = math.exp %25 : vector<2x92xf32>
    %cst_15 = arith.constant 1.000000e+00 : f32
    %27 = vector.broadcast %cst_15 : f32 to vector<2x92xf32>
    %28 = arith.addf %27, %26 : vector<2x92xf32>
    %29 = arith.divf %27, %28 : vector<2x92xf32>
    %30 = arith.truncf %29 : vector<2x92xf32> to vector<2x92xbf16>
    %c0_16 = arith.constant 0 : index
    %c0_17 = arith.constant 0 : index
    %31 = vector.load %arg8[%c0_16, %c0_17] : memref<2x92xbf16, #tpu.memory_space<vmem>>, vector<2x92xbf16>
    tpu.vector_store %arg8[%c0_16, %c0_17], %30 {strides = array<i32>} : memref<2x92xbf16, #tpu.memory_space<vmem>>, vector<2x92xbf16>,
    return
  }
  func.func @transform_0(%arg0: i32) -> (i32, i32) {
    %c0_i32 = arith.constant 0 : i32
    %c0_i32_0 = arith.constant 0 : i32
    return %arg0, %c0_i32 : i32, i32
  }
  func.func @transform_1(%arg0: i32) -> (i32, i32) {
    %c0_i32 = arith.constant 0 : i32
    %c0_i32_0 = arith.constant 0 : i32
    %c0_i32_1 = arith.constant 0 : i32
    return %c0_i32, %c0_i32_0 : i32, i32
  }
  func.func @transform_2(%arg0: i32) -> (i32, i32) {
    %c0_i32 = arith.constant 0 : i32
    %c0_i32_0 = arith.constant 0 : i32
    %c0_i32_1 = arith.constant 0 : i32
    return %c0_i32, %c0_i32_0 : i32, i32
  }
  func.func @transform_3(%arg0: i32) -> (i32, i32) {
    %c0_i32 = arith.constant 0 : i32
    %c0_i32_0 = arith.constant 0 : i32
    %c0_i32_1 = arith.constant 0 : i32
    return %c0_i32, %c0_i32_0 : i32, i32
  }
  func.func @transform_4(%arg0: i32) -> (i32, i32) {
    %c0_i32 = arith.constant 0 : i32
    %c0_i32_0 = arith.constant 0 : i32
    %c0_i32_1 = arith.constant 0 : i32
    return %c0_i32, %c0_i32_0 : i32, i32
  }
  func.func @transform_5(%arg0: i32) -> (i32, i32) {
    %c0_i32 = arith.constant 0 : i32
    %c0_i32_0 = arith.constant 0 : i32
    %c0_i32_1 = arith.constant 0 : i32
    return %c0_i32, %c0_i32_0 : i32, i32
  }
  func.func @transform_6(%arg0: i32) -> (i32, i32) {
    %c0_i32 = arith.constant 0 : i32
    %c0_i32_0 = arith.constant 0 : i32
    %c0_i32_1 = arith.constant 0 : i32
    return %c0_i32, %c0_i32_0 : i32, i32
  }
  func.func @transform_7(%arg0: i32) -> (i32, i32) {
    %c0_i32 = arith.constant 0 : i32
    %c0_i32_0 = arith.constant 0 : i32
    return %arg0, %c0_i32 : i32, i32
  }
}

</mosaic_0001>

<bundles_post_ra>
// kernel: tpu_custom_call.1
= control target key start
LH: loop header
LB: loop body
LE: loop exit
PB: predicated region body
PF: predicated region fallthrough
CT: control target
= control target key end

     0   :  { %12 = vsyncpa [#allocation3], 0  ;;  %s827_s0 = inlined_call_operand.vmem [shape: f32[2,128], index: 0, kind: input, shape index: {}]   ;;  %s828_s1 = inlined_call_operand.hbm [shape: bf16[128,256], index: 1, kind: input, shape index: {}]   ;;  %s829_s2 = inlined_call_operand.vmem [shape: f32[1,256], index: 2, kind: input, shape index: {}]   ;;  %s830_s3 = inlined_call_operand.hbm [shape: bf16[128,256], index: 3, kind: input, shape index: {}]   ;;  %s831_s4 = inlined_call_operand.vmem [shape: f32[1,256], index: 4, kind: input, shape index: {}]   ;;  %s832_s5 = inlined_call_operand.vmem [shape: bf16[128,92], index: 5, kind: input, shape index: {}]   ;;  %s833_s6 = inlined_call_operand.vmem [shape: f32[1,92], index: 6, kind: input, shape index: {}]   ;;  %s834_s7 = inlined_call_operand.hbm [shape: bf16[2,92], index: 7, kind: output, shape index: {}]  }
   0x1   :  { %13 = vsyncpa [#allocation6], 0 }
   0x2   :  { %14 = vsyncpa [#allocation4], 0  ;;  %s707_s24 = smov [#allocation2]   ;;  %s635_s28 = scalar_lea.hbm %s828_s1, 2048 }
   0x3   :  { %s22_s25 = sshll.u32 %s707_s24, 4  ;;  %p636_p0 = scmp.ne.s32.totalorder %s828_s1, %s635_s28  ;;  %s23_s25 = int_to_ptr.vmem [resolvable:$true] %s22_s25 }
   0x4   :  { %p639_p1 = scmp.lt.u32.totalorder %s635_s28, %s828_s1 }
   0x6   :  { %p641_p2 = pnand %p639_p1, %p636_p0 }
   0x8   :  { %644 = shalt.err (!%p641_p2)
}
   0x9   :  { %s645_s10 = scalar_lea.vmem %s23_s25, 2048  ;;  %p650_p4 = scmp.lt.s32.totalorder %s23_s25, %s23_s25 }
   0xa   :  { %p646_p3 = scmp.ne.s32.totalorder %s23_s25, %s645_s10  ;;  %p651_p5 = scmp.lt.s32.totalorder %s645_s10, %s645_s10 }
   0xc   :  { %p652_p6 = por %p651_p5, %p650_p4 }
   0xe   :  { %p653_p7 = pnand %p652_p6, %p646_p3 }
  0x10   :  { %656 = shalt.err (!%p653_p7)
}
  0x11   :  { %s708_s11 = smov 128   ;;  %s709_s12 = smov 8  }
  0x12   :  { %28 = dma.hbm_to_vmem [thread:$0]  %s828_s1, 2048, %s23_s25, [#allocation3], %s708_s11, %s708_s11, %s709_s12  }
  0x13   :  { %s710_s15 = smov [#allocation5]   ;;  %s657_s19 = scalar_lea.hbm %s830_s3, 2048 }
  0x14   :  { %s36_s16 = sshll.u32 %s710_s15, 4  ;;  %p658_p8 = scmp.ne.s32.totalorder %s830_s3, %s657_s19  ;;  %s37_s16 = int_to_ptr.vmem [resolvable:$true] %s36_s16 }
  0x15   :  { %p661_p9 = scmp.lt.u32.totalorder %s657_s19, %s830_s3 }
  0x17   :  { %p663_p10 = pnand %p661_p9, %p658_p8 }
  0x19   :  { %666 = shalt.err (!%p663_p10)
}
  0x1a   :  { %s667_s24 = scalar_lea.vmem %s37_s16, 2048  ;;  %p672_p12 = scmp.lt.s32.totalorder %s37_s16, %s37_s16 }
  0x1b   :  { %p668_p11 = scmp.ne.s32.totalorder %s37_s16, %s667_s24  ;;  %p673_p13 = scmp.lt.s32.totalorder %s667_s24, %s667_s24 }
  0x1d   :  { %p674_p0 = por %p673_p13, %p672_p12 }
  0x1f   :  { %p675_p1 = pnand %p674_p0, %p668_p11 }
  0x21   :  { %678 = shalt.err (!%p675_p1)
}
  0x22   :  { %42 = dma.hbm_to_vmem [thread:$0]  %s830_s3, 2048, %s37_s16, [#allocation6], %s708_s11, %s708_s11, %s709_s12  }
  0x23   :  { %701 = dma.done.wait [#allocation3], 2048  }
  0x24   :  { %702 = vsyncadd [#allocation3], 4294965248 }
  0x25   :  { %703 = dma.done.wait [#allocation6], 2048  }
  0x26   :  { %704 = vsyncadd [#allocation6], 4294965248  ;;  %v711_v0 = vmov 0   ;;  %v575_v1 = vld [vmem:[#allocation2 + $0x4] ss:$8 sps:$4 sm:$0xff]   ;;  %v712_v36 = vmov 0.0   ;;  %v76_v42 = vlaneseq }
  0x27   :  { %198 = vmatprep.mubr.bf16.mxu0 %v711_v0  ;;  %349 = vmatprep.mubr.bf16.mxu1 %v711_v0  ;;  %v577_v2 = vld [vmem:[#allocation2] ss:$8 sps:$4 sm:$0xff]   ;;  %v578_v3 = vld [vmem:[#allocation2 + $0x14] ss:$8 sps:$4 sm:$0xff]   ;;  %v580_v4 = vld [vmem:[#allocation2 + $0x10] ss:$8 sps:$4 sm:$0xff]  }
  0x28   :  { %166 = vmatprep.subr.bf16.mxu0 %v575_v1  ;;  %v581_v5 = vld [vmem:[#allocation2 + $0x24] ss:$8 sps:$4 sm:$0xff]   ;;  %v583_v6 = vld [vmem:[#allocation2 + $0x20] ss:$8 sps:$4 sm:$0xff]   ;;  %v584_v7 = vld [vmem:[#allocation2 + $0x34] ss:$8 sps:$4 sm:$0xff]  }
  0x29   :  { %167 = vmatpush1.bf16.msra.mxu0 %v577_v2  ;;  %v586_v8 = vld [vmem:[#allocation2 + $0x30] ss:$8 sps:$4 sm:$0xff]   ;;  %v587_v9 = vld [vmem:[#allocation2 + $0x44] ss:$8 sps:$4 sm:$0xff]   ;;  %v601_v11 = vld [vmem:[#allocation5] ss:$8 sps:$4 sm:$0xff]  }
  0x2a   :  { %168 = vmatprep.subr.bf16.mxu0 %v578_v3  ;;  %v599_v10 = vld [vmem:[#allocation5 + $0x4] ss:$8 sps:$4 sm:$0xff]   ;;  %v602_v12 = vld [vmem:[#allocation5 + $0x14] ss:$8 sps:$4 sm:$0xff]   ;;  %v589_v13 = vld [vmem:[#allocation2 + $0x40] ss:$8 sps:$4 sm:$0xff]  }
  0x2b   :  { %317 = vmatprep.subr.bf16.mxu1 %v599_v10  ;;  %v604_v14 = vld [vmem:[#allocation5 + $0x10] ss:$8 sps:$4 sm:$0xff]   ;;  %v605_v15 = vld [vmem:[#allocation5 + $0x24] ss:$8 sps:$4 sm:$0xff]   ;;  %v590_v16 = vld [vmem:[#allocation2 + $0x54] ss:$8 sps:$4 sm:$0xff]  }
  0x2c   :  { %318 = vmatpush1.bf16.msra.mxu1 %v601_v11  ;;  %v592_v17 = vld [vmem:[#allocation2 + $0x50] ss:$8 sps:$4 sm:$0xff]   ;;  %v593_v18 = vld [vmem:[#allocation2 + $0x64] ss:$8 sps:$4 sm:$0xff]   ;;  %v607_v19 = vld [vmem:[#allocation5 + $0x20] ss:$8 sps:$4 sm:$0xff]  }
  0x2d   :  { %169 = vmatpush1.bf16.msra.mxu0 %v580_v4  ;;  %319 = vmatprep.subr.bf16.mxu1 %v602_v12  ;;  %v608_v20 = vld [vmem:[#allocation5 + $0x34] ss:$8 sps:$4 sm:$0xff]   ;;  %v610_v21 = vld [vmem:[#allocation5 + $0x30] ss:$8 sps:$4 sm:$0xff]   ;;  %v595_v22 = vld [vmem:[#allocation2 + $0x60] ss:$8 sps:$4 sm:$0xff]  }
  0x2e   :  { %170 = vmatprep.subr.bf16.mxu0 %v581_v5  ;;  %v611_v23 = vld [vmem:[#allocation5 + $0x44] ss:$8 sps:$4 sm:$0xff]   ;;  %v596_v24 = vld [vmem:[#allocation2 + $0x74] ss:$8 sps:$4 sm:$0xff]   ;;  %v613_v25 = vld [vmem:[#allocation5 + $0x40] ss:$8 sps:$4 sm:$0xff]  }
  0x2f   :  { %v598_v26 = vld [vmem:[#allocation2 + $0x70] ss:$8 sps:$4 sm:$0xff]   ;;  %v56_v27 = vld [vmem:[%s827_s0] sm:$0x3]  ;;  %v614_v28 = vld [vmem:[#allocation5 + $0x54] ss:$8 sps:$4 sm:$0xff]  }
  0x30   :  { %320 = vmatpush1.bf16.msra.mxu1 %v604_v14  ;;  %v57_v29 = vpack.c.bf16 %v56_v27, %v56_v27  ;;  %v616_v30 = vld [vmem:[#allocation5 + $0x50] ss:$8 sps:$4 sm:$0xff]   ;;  %v617_v31 = vld [vmem:[#allocation5 + $0x64] ss:$8 sps:$4 sm:$0xff]   ;;  %v619_v32 = vld [vmem:[#allocation5 + $0x60] ss:$8 sps:$4 sm:$0xff]  }
  0x31   :  { %171 = vmatpush1.bf16.msra.mxu0 %v583_v6  ;;  %321 = vmatprep.subr.bf16.mxu1 %v605_v15  ;;  %v620_v33 = vld [vmem:[#allocation5 + $0x74] ss:$8 sps:$4 sm:$0xff]   ;;  %v622_v34 = vld [vmem:[#allocation5 + $0x70] ss:$8 sps:$4 sm:$0xff]   ;;  %v623_v35 = vld [vmem:[%s832_s5] sm:$0xff]   ;;  %v77_v43 = vshrl.u32 %v76_v42, 7 }
  0x32   :  { %172 = vmatprep.subr.bf16.mxu0 %v584_v7  ;;  %v624_v37 = vld [vmem:[%s832_s5 + $0x8] sm:$0xff]   ;;  %v625_v38 = vld [vmem:[%s832_s5 + $0x10] sm:$0xff]   ;;  %v626_v39 = vld [vmem:[%s832_s5 + $0x18] sm:$0xff]   ;;  %vm713_vm0 = vmmov 0   ;;  %vm478_vm1 = vcmask 745472  }
  0x33   :  { %v627_v40 = vld [vmem:[%s832_s5 + $0x20] sm:$0xff]   ;;  %v628_v41 = vld [vmem:[%s832_s5 + $0x28] sm:$0xff]   ;;  %v78_v44 = vsub.s32 0, %v77_v43  ;;  %v82_v46 = vsub.s32 1, %v77_v43  ;;  %v629_v57 = vld [vmem:[%s832_s5 + $0x30] sm:$0xff]  }
  0x34   :  { %322 = vmatpush1.bf16.msra.mxu1 %v607_v19  ;;  %v74_v45 = vld [vmem:[%s829_s2] sm:$0x3]  ;;  %v630_v58 = vld [vmem:[%s832_s5 + $0x38] sm:$0xff]  }
  0x35   :  { %173 = vmatpush1.bf16.msra.mxu0 %v586_v8  ;;  %323 = vmatprep.subr.bf16.mxu1 %v608_v20  ;;  %v79_v47 = vrot.slane %v74_v45, %v78_v44  ;;  %v83_v48 = vrot.slane %v74_v45, %v82_v46  ;;  %v225_v59 = vld [vmem:[%s831_s4] sm:$0x3]  ;;  %s714_s4 = smov [#allocation7]  }
  0x36   :  { %174 = vmatprep.subr.bf16.mxu0 %v587_v9  ;;  %v230_v60 = vrot.slane %v225_v59, %v78_v44  ;;  %v234_v61 = vrot.slane %v225_v59, %v82_v46  ;;  %v528_v6 = vld [vmem:[%s833_s6] ss:$0 sm:$0xff]  ;;  %s486_s23 = sshll.u32 %s714_s4, 4  ;;  %s487_s23 = int_to_ptr.vmem [resolvable:$true] %s486_s23 }
  0x37   :  { %s679_s24 = scalar_lea.vmem %s487_s23, 16  ;;  %s683_s6 = scalar_lea.vmem %s487_s23, 32 }
  0x38   :  { %324 = vmatpush1.bf16.msra.mxu1 %v610_v21  ;;  %p680_p2 = scmp.ne.s32.totalorder %s487_s23, %s679_s24  ;;  %p684_p3 = scmp.lt.s32.totalorder %s487_s23, %s487_s23 }
  0x39   :  { %175 = vmatpush1.bf16.msra.mxu0 %v589_v13  ;;  %325 = vmatprep.subr.bf16.mxu1 %v611_v23  ;;  %p685_p4 = scmp.lt.s32.totalorder %s683_s6, %s679_s24 }
  0x3a   :  { %176 = vmatprep.subr.bf16.mxu0 %v590_v16 }
  0x3b   :  { %p686_p5 = por %p685_p4, %p684_p3 }
  0x3c   :  { %326 = vmatpush1.bf16.msra.mxu1 %v613_v25 }
  0x3d   :  { %177 = vmatpush1.bf16.msra.mxu0 %v592_v17  ;;  %327 = vmatprep.subr.bf16.mxu1 %v614_v28  ;;  %p687_p6 = pnand %p686_p5, %p680_p2 }
  0x3e   :  { %178 = vmatprep.subr.bf16.mxu0 %v593_v18 }
  0x40   :  { %328 = vmatpush1.bf16.msra.mxu1 %v616_v30 }
  0x41   :  { %179 = vmatpush1.bf16.msra.mxu0 %v595_v22  ;;  %329 = vmatprep.subr.bf16.mxu1 %v617_v31 }
  0x42   :  { %180 = vmatprep.subr.bf16.mxu0 %v596_v24 }
  0x44   :  { %330 = vmatpush1.bf16.msra.mxu1 %v619_v32 }
  0x45   :  { %181 = vmatpush1.bf16.msra.mxu0 %v598_v26  ;;  %331 = vmatprep.subr.bf16.mxu1 %v620_v33 }
  0x46   :  { %547 = vmatprep.subr.bf16.mxu0 %v712_v36 }
  0x48   :  { %199 = vmatmul.mubr.bf16.vlgmr.msra.gmra.mrb[0].mxu0 %v57_v29  ;;  %332 = vmatpush1.bf16.msra.mxu1 %v622_v34 }
  0x49   :  { %548 = vmatpush3.bf16.msra.mxu0 %v623_v35  ;;  %563 = vmatprep.mubr.msk.bf16.mxu0 %vm713_vm0, %v712_v36 }
  0x4a   :  { %549 = vmatprep.subr.bf16.mxu0 %v712_v36 }
  0x4d   :  { %550 = vmatpush3.bf16.msra.mxu0 %v624_v37 }
  0x4e   :  { %551 = vmatprep.subr.bf16.mxu0 %v712_v36 }
  0x51   :  { %552 = vmatpush3.bf16.msra.mxu0 %v625_v38 }
  0x52   :  { %553 = vmatprep.subr.bf16.mxu0 %v712_v36 }
  0x55   :  { %554 = vmatpush3.bf16.msra.mxu0 %v626_v39 }
  0x56   :  { %555 = vmatprep.subr.bf16.mxu0 %v712_v36 }
  0x59   :  { %556 = vmatpush3.bf16.msra.mxu0 %v627_v40 }
  0x5a   :  { %557 = vmatprep.subr.bf16.mxu0 %v712_v36 }
  0x5d   :  { %558 = vmatpush3.bf16.msra.mxu0 %v628_v41 }
  0x5e   :  { %559 = vmatprep.subr.bf16.mxu0 %v712_v36 }
  0x61   :  { %560 = vmatpush3.bf16.msra.mxu0 %v629_v57 }
  0x62   :  { %561 = vmatprep.subr.bf16.mxu0 %v712_v36 }
  0x65   :  { %562 = vmatpush3.bf16.msra.mxu0 %v630_v58 }
 0x11b   :  { %v200_v49 = vpop.f32.mrb[0].mxu0 }
 0x11c   :  { %v201_v50 = vadd.f32 %v200_v49, %v79_v47  ;;  %v202_v51 = vpop.f32.mrb[1].mxu0 }
 0x11d   :  { %v203_v52 = vadd.f32 %v202_v51, %v83_v48  ;;  %v204_v53 = vpop.f32.mrb[2].mxu0 }
 0x11e   :  { %v205_v54 = vpop.f32.mrb[3].mxu0 }
 0x11f   :  { %v207_v55 = vmax.f32 %v201_v50, %v203_v52 }
 0x121   :  { %v208_v56 = vpack.c.bf16 %v207_v55, %v207_v55 }
 0x123   :  { %350 = vmatmul.mubr.bf16.vlgmr.msra.gmra.mrb[0].mxu1 %v208_v56 }
 0x1f6   :  { %v351_v62 = vpop.f32.mrb[0].mxu1 }
 0x1f7   :  { %v352_v63 = vadd.f32 %v351_v62, %v230_v60  ;;  %v353_v0 = vpop.f32.mrb[1].mxu1 }
 0x1f8   :  { %v354_v1 = vadd.f32 %v353_v0, %v234_v61  ;;  %v355_v2 = vpop.f32.mrb[2].mxu1 }
 0x1f9   :  { %v356_v3 = vpop.f32.mrb[3].mxu1 }
 0x1fa   :  { %v358_v4 = vmax.f32 %v352_v63, %v354_v1 }
 0x1fc   :  { %v359_v5 = vpack.c.bf16 %v358_v4, %v358_v4 }
 0x1fe   :  { %564 = vmatmul.mubr.bf16.vlgmr.msra.gmra.mrb[4].mxu0 %v359_v5 }
 0x2d1   :  { %v465_v7 = vpop.f32.mrb[4].mxu0 }
 0x2d2   :  { %v466_v8 = vadd.f32 %v528_v6, %v465_v7  ;;  %v565_v9 = vpop.f32.mrb[5].mxu0 }
 0x2d3   :  { %v468_v10 = vpop.f32.mrb[6].mxu0 }
 0x2d4   :  { %v537_v11 = vmul.f32 -1.442695, %v466_v8  ;;  %v566_v12 = vpop.f32.mrb[7].mxu0 }
 0x2d6   :  { %631 = vpow2.f32 %v537_v11 }
 0x2e0   :  { %v632_v13 = vpop.eup %631 }
 0x2e1   :  { %v474_v14 = vadd.f32 1.0, %v632_v13 }
 0x2e3   :  { %633 = vrcp.f32 %v474_v14 }
 0x2ed   :  { %v634_v15 = vpop.eup %633 }
 0x2ee   :  { %v477_v16 = vpack.c.bf16 %v634_v15, %v634_v15 }
 0x2f0   :  { %479 = vst.msk [vmem:[#allocation7] sm:$0x1] %vm478_vm1, %v477_v16 }
 0x2f1   :  { %690 = shalt.err (!%p687_p6)
}
 0x2f2   :  { %s691_s3 = scalar_lea.hbm %s834_s7, 16 }
 0x2f3   :  { %p692_p7 = scmp.ne.s32.totalorder %s834_s7, %s691_s3  ;;  %p695_p8 = scmp.lt.u32.totalorder %s691_s3, %s834_s7 }
 0x2f5   :  { %p697_p9 = pnand %p695_p8, %p692_p7 }
 0x2f7   :  { %700 = shalt.err (!%p697_p9)
}
 0x2f8   :  { %489 = dma.vmem_to_hbm [thread:$0]  %s487_s23, 16, %s834_s7, [#allocation4]  }
 0x2f9   :  { %705 = dma.done.wait [#allocation4], 16  }
 0x2fa   :  { %706 = vsyncadd [#allocation4], 4294967280 }
 0x2fb   :  { %493 = vsyncpa [#allocation3], 1 }
 0x2fc   :  { %494 = vsyncpa [#allocation6], 1 }
 0x2fd   :  { %495 = vsyncpa [#allocation4], 1 }

</bundles_post_ra>
